<compile_context>
chip_gen: v7x
topology: tpu7x:2x2x1
jax: 0.10.0
libtpu: 0.0.40
codegen_flags: <defaults>
</compile_context>

<pallas_src>
import jax
import jax.numpy as jnp
from jax.experimental import pallas as pl
from jax.experimental.pallas import tpu as pltpu

IN_DIM = 28 * 28          # 784
IN_PAD = 7 * 128          # 896  (lane-dense padding of 784)
HIDDEN = 100              # default hidden_layer_sizes=[100]
HID_PAD = 128             # lane-dense padding of 100


def _round_up(x, m):
    return ((x + m - 1) // m) * m


def autoencoder_kernel(x_ref, w1_ref, b1_ref, w2_ref, b2_ref, o_ref):
    # encoder: Linear(784 -> 100) + ReLU   (padded to 896 -> 128)
    h = jnp.dot(x_ref[...], w1_ref[...], preferred_element_type=jnp.float32)
    h = jnp.maximum(h + b1_ref[...], 0.0)            # (bm, 128) f32, padded lanes stay 0
    # decoder: Linear(100 -> 784) + Sigmoid (padded to 128 -> 896)
    y = jnp.dot(h.astype(w2_ref.dtype), w2_ref[...],
                preferred_element_type=jnp.float32)
    y = y + b2_ref[...]                              # (bm, 896) f32
    e = jnp.exp(-y)                                  # EUP exp
    o_ref[...] = pl.reciprocal(1.0 + e, approx=True)  # EUP reciprocal (frees VALU)


def autoencoder_forward(x, w1, b1, w2, b2, *, bm=512,
                        compute_dtype=jnp.bfloat16):
    """x: (B, 784) f32.  w1: (784,100), b1: (1,100), w2: (100,784), b2: (1,784)."""
    B, D = x.shape
    assert D == IN_DIM
    assert w1.shape == (IN_DIM, HIDDEN) and w2.shape == (HIDDEN, IN_DIM)

    # Batch tile: big enough to fill the MXU, but never bigger than the
    # (sublane-rounded) batch.  Pad B up to a multiple of the tile.
    bm = min(bm, _round_up(B, 8))
    B_pad = _round_up(B, bm)

    # Zero-pad to lane-dense shapes and cast matmul inputs to bf16.
    x_p = jnp.zeros((B_pad, IN_PAD), compute_dtype).at[:B, :IN_DIM].set(
        x.astype(compute_dtype))
    w1_p = jnp.zeros((IN_PAD, HID_PAD), compute_dtype).at[:IN_DIM, :HIDDEN].set(
        w1.astype(compute_dtype))
    b1_p = jnp.zeros((1, HID_PAD), jnp.float32).at[:, :HIDDEN].set(
        b1.reshape(1, HIDDEN).astype(jnp.float32))
    w2_p = jnp.zeros((HID_PAD, IN_PAD), compute_dtype).at[:HIDDEN, :IN_DIM].set(
        w2.astype(compute_dtype))
    b2_p = jnp.zeros((1, IN_PAD), jnp.float32).at[:, :IN_DIM].set(
        b2.reshape(1, IN_DIM).astype(jnp.float32))

    grid = (B_pad // bm,)
    out = pl.pallas_call(
        autoencoder_kernel,
        out_shape=jax.ShapeDtypeStruct((B_pad, IN_PAD), jnp.float32),
        grid_spec=pltpu.PrefetchScalarGridSpec(
            num_scalar_prefetch=0,
            grid=grid,
            in_specs=[
                pl.BlockSpec((bm, IN_PAD), lambda i: (i, 0)),        # x tile
                pl.BlockSpec((IN_PAD, HID_PAD), lambda i: (0, 0)),   # W1 (resident)
                pl.BlockSpec((1, HID_PAD), lambda i: (0, 0)),        # b1
                pl.BlockSpec((HID_PAD, IN_PAD), lambda i: (0, 0)),   # W2 (resident)
                pl.BlockSpec((1, IN_PAD), lambda i: (0, 0)),         # b2
            ],
            out_specs=pl.BlockSpec((bm, IN_PAD), lambda i: (i, 0)),
        ),
        compiler_params=pltpu.CompilerParams(
            dimension_semantics=("parallel",)),
    )(x_p, w1_p, b1_p, w2_p, b2_p)
    return out[:B, :IN_DIM]


def init_params(key):
    """Deterministic init mimicking PyTorch nn.Linear default (uniform +-1/sqrt(fan_in))."""
    k1, k2, k3, k4 = jax.random.split(key, 4)
    bound1 = 1.0 / (IN_DIM ** 0.5)
    bound2 = 1.0 / (HIDDEN ** 0.5)
    # stored as (in, out) so the kernel does x @ W
    w1 = jax.random.uniform(k1, (IN_DIM, HIDDEN), jnp.float32, -bound1, bound1)
    b1 = jax.random.uniform(k2, (1, HIDDEN), jnp.float32, -bound1, bound1)
    w2 = jax.random.uniform(k3, (HIDDEN, IN_DIM), jnp.float32, -bound2, bound2)
    b2 = jax.random.uniform(k4, (1, IN_DIM), jnp.float32, -bound2, bound2)
    return w1, b1, w2, b2


def reference_forward(x, w1, b1, w2, b2):
    h = jnp.maximum(x @ w1 + b1, 0.0)
    return jax.nn.sigmoid(h @ w2 + b2)


if __name__ == "__main__":
    key = jax.random.PRNGKey(0)
    kx, kp = jax.random.split(key)

    B = 16                                  # small batch
    x = jax.random.uniform(kx, (B, IN_DIM), jnp.float32)   # "MNIST-like" [0,1] images, flattened
    w1, b1, w2, b2 = init_params(kp)

    out = autoencoder_forward(x, w1, b1, w2, b2)
    out = jax.block_until_ready(out)

    ref = reference_forward(x, w1, b1, w2, b2)
    assert out.shape == (B, IN_DIM)
    # bf16 MXU inputs + approx reciprocal => loosened tolerance vs the f32 reference.
    assert jnp.allclose(out, ref, atol=2e-2, rtol=2e-2)

    print("KERNEL_OK")
</pallas_src>

<mosaic_0001>
module attributes {stable_mosaic.version = 11 : i64} {
  func.func @autoencoder_kernel(%arg0: i32, %arg1: memref<16x896xbf16, #tpu.memory_space<vmem>>, %arg2: memref<896x128xbf16, #tpu.memory_space<vmem>>, %arg3: memref<1x128xf32, #tpu.memory_space<vmem>>, %arg4: memref<128x896xbf16, #tpu.memory_space<vmem>>, %arg5: memref<1x896xf32, #tpu.memory_space<vmem>>, %arg6: memref<16x896xf32, #tpu.memory_space<vmem>>) attributes {dimension_semantics = [#tpu.dimension_semantics<parallel>], iteration_bounds = array<i64: 1>, scalar_prefetch = 0 : i64, scratch_operands = 0 : i64, tpu.core_type = #tpu.core_type<tc>, window_params = [{transform_indices = @transform_0, window_bounds = array<i64: 16, 896>}, {pipeline_mode = #tpu.pipeline_mode<synchronous>, transform_indices = @transform_1, window_bounds = array<i64: 896, 128>}, {pipeline_mode = #tpu.pipeline_mode<synchronous>, transform_indices = @transform_2, window_bounds = array<i64: 1, 128>}, {pipeline_mode = #tpu.pipeline_mode<synchronous>, transform_indices = @transform_3, window_bounds = array<i64: 128, 896>}, {pipeline_mode = #tpu.pipeline_mode<synchronous>, transform_indices = @transform_4, window_bounds = array<i64: 1, 896>}, {transform_indices = @transform_5, window_bounds = array<i64: 16, 896>}]} {
    %c0 = arith.constant 0 : index
    %c0_0 = arith.constant 0 : index
    %0 = vector.load %arg1[%c0, %c0_0] : memref<16x896xbf16, #tpu.memory_space<vmem>>, vector<16x896xbf16>
    %c0_1 = arith.constant 0 : index
    %c0_2 = arith.constant 0 : index
    %1 = vector.load %arg2[%c0_1, %c0_2] : memref<896x128xbf16, #tpu.memory_space<vmem>>, vector<896x128xbf16>
    %cst = arith.constant dense<0.000000e+00> : vector<16x128xf32>
    %2 = tpu.matmul %0, %1, %cst {dimension_numbers = #tpu.dot_dimension_numbers<[1], [0], [0], [1], [0, 0, 1, 1], [], []>} : vector<16x896xbf16>, vector<896x128xbf16>, vector<16x128xf32> -> vector<16x128xf32>
    %c0_3 = arith.constant 0 : index
    %c0_4 = arith.constant 0 : index
    %3 = vector.load %arg3[%c0_3, %c0_4] : memref<1x128xf32, #tpu.memory_space<vmem>>, vector<1x128xf32>
    %4 = vector.broadcast %3 : vector<1x128xf32> to vector<16x128xf32>
    %5 = arith.addf %2, %4 : vector<16x128xf32>
    %cst_5 = arith.constant 0.000000e+00 : f32
    %6 = vector.broadcast %cst_5 : f32 to vector<16x128xf32>
    %7 = arith.maximumf %5, %6 : vector<16x128xf32>
    %8 = arith.truncf %7 : vector<16x128xf32> to vector<16x128xbf16>
    %c0_6 = arith.constant 0 : index
    %c0_7 = arith.constant 0 : index
    %9 = vector.load %arg4[%c0_6, %c0_7] : memref<128x896xbf16, #tpu.memory_space<vmem>>, vector<128x896xbf16>
    %cst_8 = arith.constant dense<0.000000e+00> : vector<16x896xf32>
    %10 = tpu.matmul %8, %9, %cst_8 {dimension_numbers = #tpu.dot_dimension_numbers<[1], [0], [0], [1], [0, 0, 1, 1], [], []>} : vector<16x128xbf16>, vector<128x896xbf16>, vector<16x896xf32> -> vector<16x896xf32>
    %c0_9 = arith.constant 0 : index
    %c0_10 = arith.constant 0 : index
    %11 = vector.load %arg5[%c0_9, %c0_10] : memref<1x896xf32, #tpu.memory_space<vmem>>, vector<1x896xf32>
    %12 = vector.broadcast %11 : vector<1x896xf32> to vector<16x896xf32>
    %13 = arith.addf %10, %12 : vector<16x896xf32>
    %cst_11 = arith.constant 0.000000e+00 : f32
    %14 = vector.broadcast %cst_11 : f32 to vector<16x896xf32>
    %15 = arith.subf %14, %13 : vector<16x896xf32>
    %16 = math.exp %15 : vector<16x896xf32>
    %cst_12 = arith.constant 1.000000e+00 : f32
    %17 = vector.broadcast %cst_12 : f32 to vector<16x896xf32>
    %18 = arith.addf %17, %16 : vector<16x896xf32>
    %19 = tpu.reciprocal %18 {approx = true} : vector<16x896xf32> -> vector<16x896xf32>
    %c0_13 = arith.constant 0 : index
    %c0_14 = arith.constant 0 : index
    %20 = vector.load %arg6[%c0_13, %c0_14] : memref<16x896xf32, #tpu.memory_space<vmem>>, vector<16x896xf32>
    tpu.vector_store %arg6[%c0_13, %c0_14], %19 {strides = array<i32>} : memref<16x896xf32, #tpu.memory_space<vmem>>, vector<16x896xf32>,
    return
  }
  func.func @transform_0(%arg0: i32) -> (i32, i32) {
    %c0_i32 = arith.constant 0 : i32
    %c0_i32_0 = arith.constant 0 : i32
    return %arg0, %c0_i32 : i32, i32
  }
  func.func @transform_1(%arg0: i32) -> (i32, i32) {
    %c0_i32 = arith.constant 0 : i32
    %c0_i32_0 = arith.constant 0 : i32
    %c0_i32_1 = arith.constant 0 : i32
    return %c0_i32, %c0_i32_0 : i32, i32
  }
  func.func @transform_2(%arg0: i32) -> (i32, i32) {
    %c0_i32 = arith.constant 0 : i32
    %c0_i32_0 = arith.constant 0 : i32
    %c0_i32_1 = arith.constant 0 : i32
    return %c0_i32, %c0_i32_0 : i32, i32
  }
  func.func @transform_3(%arg0: i32) -> (i32, i32) {
    %c0_i32 = arith.constant 0 : i32
    %c0_i32_0 = arith.constant 0 : i32
    %c0_i32_1 = arith.constant 0 : i32
    return %c0_i32, %c0_i32_0 : i32, i32
  }
  func.func @transform_4(%arg0: i32) -> (i32, i32) {
    %c0_i32 = arith.constant 0 : i32
    %c0_i32_0 = arith.constant 0 : i32
    %c0_i32_1 = arith.constant 0 : i32
    return %c0_i32, %c0_i32_0 : i32, i32
  }
  func.func @transform_5(%arg0: i32) -> (i32, i32) {
    %c0_i32 = arith.constant 0 : i32
    %c0_i32_0 = arith.constant 0 : i32
    return %arg0, %c0_i32 : i32, i32
  }
}

</mosaic_0001>

<bundles_post_ra>
// kernel: tpu_custom_call.1
= control target key start
LH: loop header
LB: loop body
LE: loop exit
PB: predicated region body
PF: predicated region fallthrough
CT: control target
= control target key end

     0   :  { %10 = vsyncpa [#allocation3], 0  ;;  %s2078_s0 = inlined_call_operand.hbm [shape: bf16[16,896], index: 0, kind: input, shape index: {}]   ;;  %s2079_s1 = inlined_call_operand.hbm [shape: bf16[896,128], index: 1, kind: input, shape index: {}]   ;;  %s2080_s2 = inlined_call_operand.vmem [shape: f32[1,128], index: 2, kind: input, shape index: {}]   ;;  %s2081_s3 = inlined_call_operand.hbm [shape: bf16[128,896], index: 3, kind: input, shape index: {}]   ;;  %s2082_s4 = inlined_call_operand.vmem [shape: f32[1,896], index: 4, kind: input, shape index: {}]   ;;  %s2083_s5 = inlined_call_operand.hbm [shape: f32[16,896], index: 5, kind: output, shape index: {}]  }
   0x1   :  { %11 = vsyncpa [#allocation6], 0 }
   0x2   :  { %12 = vsyncpa [#allocation4], 0  ;;  %s1943_s18 = smov [#allocation5]   ;;  %s1849_s22 = scalar_lea.hbm %s2079_s1, 7168 }
   0x3   :  { %s30_s19 = sshll.u32 %s1943_s18, 4  ;;  %p1850_p0 = scmp.ne.s32.totalorder %s2079_s1, %s1849_s22  ;;  %s31_s19 = int_to_ptr.vmem [resolvable:$true] %s30_s19 }
   0x4   :  { %p1853_p1 = scmp.lt.u32.totalorder %s1849_s22, %s2079_s1 }
   0x6   :  { %p1855_p2 = pnand %p1853_p1, %p1850_p0 }
   0x8   :  { %1858 = shalt.err (!%p1855_p2)
}
   0x9   :  { %s1859_s27 = scalar_lea.vmem %s31_s19, 7168  ;;  %p1864_p4 = scmp.lt.s32.totalorder %s31_s19, %s31_s19 }
   0xa   :  { %p1860_p3 = scmp.ne.s32.totalorder %s31_s19, %s1859_s27  ;;  %p1865_p5 = scmp.lt.s32.totalorder %s1859_s27, %s1859_s27 }
   0xc   :  { %p1866_p6 = por %p1865_p5, %p1864_p4 }
   0xe   :  { %p1867_p7 = pnand %p1866_p6, %p1860_p3 }
  0x10   :  { %1870 = shalt.err (!%p1867_p7)
}
  0x11   :  { %s1944_s28 = smov 64   ;;  %s1945_s29 = smov 4  }
  0x12   :  { %36 = dma.hbm_to_vmem [thread:$0]  %s2079_s1, 7168, %s31_s19, [#allocation6], %s1944_s28, %s1944_s28, %s1945_s29  }
  0x13   :  { %s1946_s7 = smov [#allocation2]   ;;  %s1871_s11 = scalar_lea.hbm %s2078_s0, 896 }
  0x14   :  { %s18_s8 = sshll.u32 %s1946_s7, 4  ;;  %p1872_p8 = scmp.ne.s32.totalorder %s2078_s0, %s1871_s11  ;;  %s19_s8 = int_to_ptr.vmem [resolvable:$true] %s18_s8 }
  0x15   :  { %p1875_p9 = scmp.lt.u32.totalorder %s1871_s11, %s2078_s0 }
  0x17   :  { %p1877_p10 = pnand %p1875_p9, %p1872_p8 }
  0x19   :  { %1880 = shalt.err (!%p1877_p10)
}
  0x1a   :  { %s1881_s16 = scalar_lea.vmem %s19_s8, 896  ;;  %p1886_p12 = scmp.lt.s32.totalorder %s19_s8, %s19_s8 }
  0x1b   :  { %p1882_p11 = scmp.ne.s32.totalorder %s19_s8, %s1881_s16  ;;  %p1887_p13 = scmp.lt.s32.totalorder %s1881_s16, %s1881_s16 }
  0x1d   :  { %p1888_p0 = por %p1887_p13, %p1886_p12 }
  0x1f   :  { %p1889_p1 = pnand %p1888_p0, %p1882_p11 }
  0x21   :  { %1892 = shalt.err (!%p1889_p1)
}
  0x22   :  { %s1947_s1 = smov 448   ;;  %s1948_s17 = smov 28  }
  0x23   :  { %24 = dma.hbm_to_vmem [thread:$0]  %s2078_s0, 896, %s19_s8, [#allocation3], %s1947_s1, %s1947_s1, %s1948_s17  }
  0x24   :  { %s1949_s20 = smov [#allocation7]   ;;  %s1893_s24 = scalar_lea.hbm %s2081_s3, 7168 }
  0x25   :  { %s44_s21 = sshll.u32 %s1949_s20, 4  ;;  %p1894_p2 = scmp.ne.s32.totalorder %s2081_s3, %s1893_s24  ;;  %s45_s21 = int_to_ptr.vmem [resolvable:$true] %s44_s21 }
  0x26   :  { %p1897_p3 = scmp.lt.u32.totalorder %s1893_s24, %s2081_s3 }
  0x28   :  { %p1899_p4 = pnand %p1897_p3, %p1894_p2 }
  0x2a   :  { %1902 = shalt.err (!%p1899_p4)
}
  0x2b   :  { %s1903_s29 = scalar_lea.vmem %s45_s21, 7168  ;;  %p1908_p6 = scmp.lt.s32.totalorder %s45_s21, %s45_s21 }
  0x2c   :  { %p1904_p5 = scmp.ne.s32.totalorder %s45_s21, %s1903_s29  ;;  %p1909_p7 = scmp.lt.s32.totalorder %s1903_s29, %s1903_s29 }
  0x2e   :  { %p1910_p8 = por %p1909_p7, %p1908_p6 }
  0x30   :  { %p1911_p9 = pnand %p1910_p8, %p1904_p5 }
  0x32   :  { %1914 = shalt.err (!%p1911_p9)
}
  0x33   :  { %50 = dma.hbm_to_vmem [thread:$0]  %s2081_s3, 7168, %s45_s21, [#allocation6], %s1947_s1, %s1947_s1, %s1948_s17  }
  0x34   :  { %1937 = dma.done.wait [#allocation3], 896  }
  0x35   :  { %1938 = vsyncadd [#allocation3], 4294966400 }
  0x36   :  { %1939 = dma.done.wait [#allocation6], 14336  }
  0x37   :  { %1940 = vsyncadd [#allocation6], 4294952960  ;;  %v1647_v0 = vld [vmem:[#allocation5 + $0x40] sm:$0xff]   ;;  %v1651_v4 = vld [vmem:[#allocation5 + $0x48] sm:$0xff]   ;;  %v1950_v38 = vmov 0.0   ;;  %vm1951_vm0 = vmmov 0  }
  0x38   :  { %v1648_v1 = vld [vmem:[#allocation5] sm:$0xff]   ;;  %1510 = vmatprep.subr.bf16.mxu0 %v1647_v0  ;;  %v1652_v5 = vld [vmem:[#allocation5 + $0x8] sm:$0xff]   ;;  %v1655_v8 = vld [vmem:[#allocation5 + $0x50] sm:$0xff]  }
  0x39   :  { %v1649_v2 = vld [vmem:[#allocation5 + $0xc0] sm:$0xff]   ;;  %1511 = vmatpush3.bf16.msra.mxu0 %v1648_v1  ;;  %v1653_v6 = vld [vmem:[#allocation5 + $0xc8] sm:$0xff]   ;;  %v1656_v9 = vld [vmem:[#allocation5 + $0x10] sm:$0xff]  }
  0x3a   :  { %v1650_v3 = vld [vmem:[#allocation5 + $0x80] sm:$0xff]   ;;  %1532 = vmatprep.subr.bf16.mxu1 %v1649_v2  ;;  %1512 = vmatprep.subr.bf16.mxu0 %v1651_v4  ;;  %v1654_v7 = vld [vmem:[#allocation5 + $0x88] sm:$0xff]   ;;  %v1657_v10 = vld [vmem:[#allocation5 + $0xd0] sm:$0xff]  }
  0x3b   :  { %1533 = vmatpush3.bf16.msra.mxu1 %v1650_v3  ;;  %v1658_v11 = vld [vmem:[#allocation5 + $0x90] sm:$0xff]   ;;  %v1659_v12 = vld [vmem:[#allocation5 + $0x58] sm:$0xff]   ;;  %v1663_v16 = vld [vmem:[#allocation5 + $0x60] sm:$0xff]  }
  0x3c   :  { %1534 = vmatprep.subr.bf16.mxu1 %v1653_v6  ;;  %v1660_v13 = vld [vmem:[#allocation5 + $0x18] sm:$0xff]   ;;  %v1664_v17 = vld [vmem:[#allocation5 + $0x20] sm:$0xff]   ;;  %v1667_v20 = vld [vmem:[#allocation5 + $0x68] sm:$0xff]  }
  0x3d   :  { %1513 = vmatpush3.bf16.msra.mxu0 %v1652_v5  ;;  %v1661_v14 = vld [vmem:[#allocation5 + $0xd8] sm:$0xff]   ;;  %v1665_v18 = vld [vmem:[#allocation5 + $0xe0] sm:$0xff]   ;;  %v1668_v21 = vld [vmem:[#allocation5 + $0x28] sm:$0xff]  }
  0x3e   :  { %1514 = vmatprep.subr.bf16.mxu0 %v1655_v8  ;;  %v1662_v15 = vld [vmem:[#allocation5 + $0x98] sm:$0xff]   ;;  %v1666_v19 = vld [vmem:[#allocation5 + $0xa0] sm:$0xff]   ;;  %v1669_v22 = vld [vmem:[#allocation5 + $0xe8] sm:$0xff]  }
  0x3f   :  { %1535 = vmatpush3.bf16.msra.mxu1 %v1654_v7  ;;  %v1670_v23 = vld [vmem:[#allocation5 + $0xa8] sm:$0xff]   ;;  %v1671_v24 = vld [vmem:[#allocation5 + $0x70] sm:$0xff]   ;;  %v1675_v28 = vld [vmem:[#allocation5 + $0x78] sm:$0xff]  }
  0x40   :  { %1536 = vmatprep.subr.bf16.mxu1 %v1657_v10  ;;  %v1672_v25 = vld [vmem:[#allocation5 + $0x30] sm:$0xff]   ;;  %v1676_v29 = vld [vmem:[#allocation5 + $0x38] sm:$0xff]   ;;  %v1678_v31 = vld [vmem:[#allocation2] ss:$28 sps:$4 sm:$0xff]  }
  0x41   :  { %1515 = vmatpush3.bf16.msra.mxu0 %v1656_v9  ;;  %v1673_v26 = vld [vmem:[#allocation5 + $0xf0] sm:$0xff]   ;;  %v1677_v30 = vld [vmem:[#allocation5 + $0xf8] sm:$0xff]   ;;  %v1680_v32 = vld [vmem:[#allocation2 + $0x4] ss:$28 sps:$4 sm:$0xff]  }
  0x42   :  { %1516 = vmatprep.subr.bf16.mxu0 %v1659_v12  ;;  %v1674_v27 = vld [vmem:[#allocation5 + $0xb0] sm:$0xff]   ;;  %v1681_v33 = vld [vmem:[#allocation5 + $0xb8] sm:$0xff]   ;;  %594 = vmatprep.mubr.bf16.mxu0 %v1680_v32  ;;  %v1682_v34 = vld [vmem:[#allocation5 + $0x140] sm:$0xff]  }
  0x43   :  { %1537 = vmatpush3.bf16.msra.mxu1 %v1658_v11  ;;  %v1683_v35 = vld [vmem:[#allocation2 + $0x8] ss:$28 sps:$4 sm:$0xff]   ;;  %v1686_v37 = vld [vmem:[#allocation5 + $0x100] sm:$0xff]   ;;  %v1694_v46 = vld [vmem:[#allocation5 + $0x158] sm:$0xff]  }
  0x44   :  { %1538 = vmatprep.subr.bf16.mxu1 %v1661_v14  ;;  %v1685_v36 = vld [vmem:[#allocation2 + $0xc] ss:$28 sps:$4 sm:$0xff]   ;;  %v1687_v39 = vld [vmem:[#allocation5 + $0x180] sm:$0xff]   ;;  %v1688_v40 = vld [vmem:[#allocation5 + $0x148] sm:$0xff]  }
  0x45   :  { %1517 = vmatpush3.bf16.msra.mxu0 %v1660_v13  ;;  %635 = vmatprep.mubr.bf16.mxu1 %v1685_v36  ;;  %v1689_v41 = vld [vmem:[#allocation5 + $0x108] sm:$0xff]   ;;  %v1691_v43 = vld [vmem:[#allocation5 + $0x150] sm:$0xff]   ;;  %v1695_v47 = vld [vmem:[#allocation5 + $0x118] sm:$0xff]  }
  0x46   :  { %1518 = vmatprep.subr.bf16.mxu0 %v1663_v16  ;;  %v1690_v42 = vld [vmem:[#allocation5 + $0x188] sm:$0xff]   ;;  %v1692_v44 = vld [vmem:[#allocation5 + $0x110] sm:$0xff]   ;;  %v1696_v48 = vld [vmem:[#allocation5 + $0x198] sm:$0xff]  }
  0x47   :  { %1539 = vmatpush3.bf16.msra.mxu1 %v1662_v15  ;;  %v1693_v45 = vld [vmem:[#allocation5 + $0x190] sm:$0xff]   ;;  %v1697_v49 = vld [vmem:[#allocation5 + $0x160] sm:$0xff]   ;;  %v1700_v52 = vld [vmem:[#allocation5 + $0x168] sm:$0xff]  }
  0x48   :  { %1540 = vmatprep.subr.bf16.mxu1 %v1665_v18  ;;  %v1698_v50 = vld [vmem:[#allocation5 + $0x120] sm:$0xff]   ;;  %v1701_v53 = vld [vmem:[#allocation5 + $0x128] sm:$0xff]   ;;  %v1703_v55 = vld [vmem:[#allocation5 + $0x170] sm:$0xff]  }
  0x49   :  { %1519 = vmatpush3.bf16.msra.mxu0 %v1664_v17  ;;  %v1699_v51 = vld [vmem:[#allocation5 + $0x1a0] sm:$0xff]   ;;  %v1702_v54 = vld [vmem:[#allocation5 + $0x1a8] sm:$0xff]   ;;  %v1704_v56 = vld [vmem:[#allocation5 + $0x130] sm:$0xff]  }
  0x4a   :  { %1520 = vmatprep.subr.bf16.mxu0 %v1667_v20  ;;  %v1705_v57 = vld [vmem:[#allocation5 + $0x1b0] sm:$0xff]   ;;  %v1710_v58 = vld [vmem:[#allocation2 + $0x14] ss:$28 sps:$4 sm:$0xff]   ;;  %v1715_v1 = vld [vmem:[#allocation7 + $0x4] ss:$28 sps:$4 sm:$0xff]  }
  0x4b   :  { %1541 = vmatpush3.bf16.msra.mxu1 %v1666_v19  ;;  %v1706_v59 = vld [vmem:[#allocation5 + $0x178] sm:$0xff]   ;;  %v1716_v2 = vld [vmem:[#allocation7 + $0x8] ss:$28 sps:$4 sm:$0xff]   ;;  %v1727_v8 = vld [vmem:[#allocation7 + $0x74] ss:$28 sps:$4 sm:$0xff]  }
  0x4c   :  { %1542 = vmatprep.subr.bf16.mxu1 %v1669_v22  ;;  %v1707_v60 = vld [vmem:[#allocation5 + $0x138] sm:$0xff]   ;;  %v1718_v3 = vld [vmem:[#allocation7 + $0xc] ss:$28 sps:$4 sm:$0xff]   ;;  %v1724_v5 = vld [vmem:[#allocation7 + $0x44] ss:$28 sps:$4 sm:$0xff]  }
  0x4d   :  { %1521 = vmatpush3.bf16.msra.mxu0 %v1668_v21  ;;  %v1711_v61 = vld [vmem:[#allocation5 + $0x1b8] sm:$0xff]   ;;  %v1725_v10 = vld [vmem:[#allocation7 + $0x70] ss:$28 sps:$4 sm:$0xff]   ;;  %v1731_v14 = vld [vmem:[#allocation7 + $0xa8] ss:$28 sps:$4 sm:$0xff]  }
  0x4e   :  { %1522 = vmatprep.subr.bf16.mxu0 %v1671_v24  ;;  %v1708_v62 = vld [vmem:[#allocation2 + $0x10] ss:$28 sps:$4 sm:$0xff]   ;;  %v1712_v63 = vld [vmem:[#allocation2 + $0x18] ss:$28 sps:$4 sm:$0xff]   ;;  %v1733_v12 = vld [vmem:[#allocation7 + $0xac] ss:$28 sps:$4 sm:$0xff]  }
  0x4f   :  { %1543 = vmatpush3.bf16.msra.mxu1 %v1670_v23  ;;  %v1713_v0 = vld [vmem:[#allocation7] ss:$28 sps:$4 sm:$0xff]   ;;  %v1719_v6 = vld [vmem:[#allocation7 + $0x38] ss:$28 sps:$4 sm:$0xff]   ;;  %v1734_v15 = vld [vmem:[#allocation7 + $0xb0] ss:$28 sps:$4 sm:$0xff]  }
  0x50   :  { %1544 = vmatprep.subr.bf16.mxu1 %v1673_v26  ;;  %v1721_v4 = vld [vmem:[#allocation7 + $0x3c] ss:$28 sps:$4 sm:$0xff]   ;;  %v1736_v13 = vld [vmem:[#allocation7 + $0xb4] ss:$28 sps:$4 sm:$0xff]   ;;  %v1739_v16 = vld [vmem:[#allocation7 + $0xe4] ss:$28 sps:$4 sm:$0xff]  }
  0x51   :  { %1523 = vmatpush3.bf16.msra.mxu0 %v1672_v25  ;;  %v1722_v7 = vld [vmem:[#allocation7 + $0x40] ss:$28 sps:$4 sm:$0xff]   ;;  %v1728_v11 = vld [vmem:[#allocation7 + $0x78] ss:$28 sps:$4 sm:$0xff]   ;;  %v1742_v17 = vld [vmem:[#allocation7 + $0xec] ss:$28 sps:$4 sm:$0xff]  }
  0x52   :  { %1524 = vmatprep.subr.bf16.mxu0 %v1675_v28  ;;  %v1730_v9 = vld [vmem:[#allocation7 + $0x7c] ss:$28 sps:$4 sm:$0xff]   ;;  %v1740_v19 = vld [vmem:[#allocation7 + $0xe8] ss:$28 sps:$4 sm:$0xff]   ;;  %v1751_v24 = vld [vmem:[#allocation7 + $0x154] ss:$28 sps:$4 sm:$0xff]  }
  0x53   :  { %1545 = vmatpush3.bf16.msra.mxu1 %v1674_v27  ;;  %v1737_v18 = vld [vmem:[#allocation7 + $0xe0] ss:$28 sps:$4 sm:$0xff]   ;;  %v1743_v22 = vld [vmem:[#allocation7 + $0x118] ss:$28 sps:$4 sm:$0xff]   ;;  %v1749_v26 = vld [vmem:[#allocation7 + $0x150] ss:$28 sps:$4 sm:$0xff]  }
  0x54   :  { %1546 = vmatprep.subr.bf16.mxu1 %v1677_v30  ;;  %v1745_v20 = vld [vmem:[#allocation7 + $0x11c] ss:$28 sps:$4 sm:$0xff]   ;;  %v1748_v21 = vld [vmem:[#allocation7 + $0x124] ss:$28 sps:$4 sm:$0xff]   ;;  %v1757_v28 = vld [vmem:[#allocation7 + $0x18c] ss:$28 sps:$4 sm:$0xff]  }
  0x55   :  { %1525 = vmatpush3.bf16.msra.mxu0 %v1676_v29  ;;  %v1746_v23 = vld [vmem:[#allocation7 + $0x120] ss:$28 sps:$4 sm:$0xff]   ;;  %v1752_v27 = vld [vmem:[#allocation7 + $0x158] ss:$28 sps:$4 sm:$0xff]   ;;  %v1755_v30 = vld [vmem:[#allocation7 + $0x188] ss:$28 sps:$4 sm:$0xff]  }
  0x56   :  { %1554 = vmatprep.subr.bf16.mxu0 %v1682_v34  ;;  %v1754_v25 = vld [vmem:[#allocation7 + $0x15c] ss:$28 sps:$4 sm:$0xff]   ;;  %v1760_v29 = vld [vmem:[#allocation7 + $0x194] ss:$28 sps:$4 sm:$0xff]  }
  0x57   :  { %1547 = vmatpush3.bf16.msra.mxu1 %v1681_v33  ;;  %v1763_v32 = vld [vmem:[#allocation7 + $0x14] ss:$28 sps:$4 sm:$0xff]   ;;  %v1952_v33 = vmov 0  }
  0x58   :  { %595 = vmatmul.mubr.bf16.vlgmr.msra.gmra.mrb[0].mxu0 %v1678_v31  ;;  %1594 = vmatprep.subr.bf16.mxu1 %v1950_v38  ;;  %v1758_v31 = vld [vmem:[#allocation7 + $0x190] ss:$28 sps:$4 sm:$0xff]  }
  0x59   :  { %1555 = vmatpush3.bf16.msra.mxu0 %v1686_v37  ;;  %676 = vmatprep.mubr.bf16.mxu0 %v1710_v58 }
  0x5a   :  { %636 = vmatmul.mubr.bf16.vlgmr.msra.gmra.mrb[0].mxu1 %v1683_v35  ;;  %1556 = vmatprep.subr.bf16.mxu0 %v1688_v40  ;;  %v1390_v35 = vld [vmem:[%s2080_s2] ss:$0 sm:$0xff] }
  0x5b   :  { %1595 = vmatpush3.bf16.msra.mxu1 %v1687_v39  ;;  %1610 = vmatprep.mubr.msk.bf16.mxu1 %vm1951_vm0, %v1950_v38 }
  0x5c   :  { %1596 = vmatprep.subr.bf16.mxu1 %v1950_v38 }
  0x5d   :  { %1557 = vmatpush3.bf16.msra.mxu0 %v1689_v41 }
  0x5e   :  { %1558 = vmatprep.subr.bf16.mxu0 %v1691_v43 }
  0x5f   :  { %1597 = vmatpush3.bf16.msra.mxu1 %v1690_v42 }
  0x60   :  { %1598 = vmatprep.subr.bf16.mxu1 %v1950_v38 }
  0x61   :  { %1559 = vmatpush3.bf16.msra.mxu0 %v1692_v44 }
  0x62   :  { %1560 = vmatprep.subr.bf16.mxu0 %v1694_v46 }
  0x63   :  { %1599 = vmatpush3.bf16.msra.mxu1 %v1693_v45 }
  0x64   :  { %1600 = vmatprep.subr.bf16.mxu1 %v1950_v38 }
  0x65   :  { %1561 = vmatpush3.bf16.msra.mxu0 %v1695_v47 }
  0x66   :  { %1562 = vmatprep.subr.bf16.mxu0 %v1697_v49 }
  0x67   :  { %1601 = vmatpush3.bf16.msra.mxu1 %v1696_v48 }
  0x68   :  { %1602 = vmatprep.subr.bf16.mxu1 %v1950_v38 }
  0x69   :  { %1563 = vmatpush3.bf16.msra.mxu0 %v1698_v50 }
  0x6a   :  { %1564 = vmatprep.subr.bf16.mxu0 %v1700_v52 }
  0x6b   :  { %1603 = vmatpush3.bf16.msra.mxu1 %v1699_v51 }
  0x6c   :  { %1604 = vmatprep.subr.bf16.mxu1 %v1950_v38 }
  0x6d   :  { %1565 = vmatpush3.bf16.msra.mxu0 %v1701_v53 }
  0x6e   :  { %1566 = vmatprep.subr.bf16.mxu0 %v1703_v55 }
  0x6f   :  { %1605 = vmatpush3.bf16.msra.mxu1 %v1702_v54 }
  0x70   :  { %1606 = vmatprep.subr.bf16.mxu1 %v1950_v38 }
  0x71   :  { %1567 = vmatpush3.bf16.msra.mxu0 %v1704_v56 }
  0x72   :  { %1568 = vmatprep.subr.bf16.mxu0 %v1706_v59 }
  0x73   :  { %1607 = vmatpush3.bf16.msra.mxu1 %v1705_v57 }
  0x74   :  { %1608 = vmatprep.subr.bf16.mxu1 %v1950_v38 }
  0x75   :  { %1569 = vmatpush3.bf16.msra.mxu0 %v1707_v60 }
  0x76   :  { %1118 = vmatprep.subr.bf16.mxu0 %v1715_v1 }
  0x77   :  { %1609 = vmatpush3.bf16.msra.mxu1 %v1711_v61 }
  0x78   :  { %677 = vmatmul.mubr.bf16.vlgmr.msra.gmra.mrb[4].mxu0 %v1708_v62  ;;  %1161 = vmatprep.subr.bf16.mxu1 %v1718_v3 }
  0x79   :  { %1119 = vmatpush1.bf16.msra.mxu0 %v1713_v0  ;;  %1150 = vmatprep.mubr.bf16.mxu0 %v1952_v33 }
  0x7a   :  { %1611 = vmatmul.mubr.bf16.vlgmr.msra.gmra.mrb[4].mxu1 %v1712_v63  ;;  %1120 = vmatprep.subr.bf16.mxu0 %v1721_v4  ;;  %v1761_v4 = vld [vmem:[#allocation7 + $0x10] ss:$28 sps:$4 sm:$0xff]  }
  0x7b   :  { %1162 = vmatpush1.bf16.msra.mxu1 %v1716_v2  ;;  %1193 = vmatprep.mubr.bf16.mxu1 %v1952_v33 }
  0x7c   :  { %1163 = vmatprep.subr.bf16.mxu1 %v1724_v5  ;;  %v1764_v5 = vld [vmem:[#allocation7 + $0x18] ss:$28 sps:$4 sm:$0xff]  }
  0x7d   :  { %1121 = vmatpush1.bf16.msra.mxu0 %v1719_v6 }
  0x7e   :  { %1122 = vmatprep.subr.bf16.mxu0 %v1727_v8  ;;  %v1765_v8 = vld [vmem:[#allocation7 + $0x48] ss:$28 sps:$4 sm:$0xff]  }
  0x7f   :  { %1164 = vmatpush1.bf16.msra.mxu1 %v1722_v7  ;;  %v1767_v7 = vld [vmem:[#allocation7 + $0x4c] ss:$28 sps:$4 sm:$0xff]  }
  0x80   :  { %1165 = vmatprep.subr.bf16.mxu1 %v1730_v9  ;;  %v1768_v9 = vld [vmem:[#allocation7 + $0x50] ss:$28 sps:$4 sm:$0xff]  }
  0x81   :  { %1123 = vmatpush1.bf16.msra.mxu0 %v1725_v10  ;;  %v1771_v10 = vld [vmem:[#allocation7 + $0x84] ss:$28 sps:$4 sm:$0xff]  }
  0x82   :  { %1124 = vmatprep.subr.bf16.mxu0 %v1733_v12  ;;  %v1772_v12 = vld [vmem:[#allocation7 + $0x88] ss:$28 sps:$4 sm:$0xff]  }
  0x83   :  { %1166 = vmatpush1.bf16.msra.mxu1 %v1728_v11  ;;  %v1769_v11 = vld [vmem:[#allocation7 + $0x80] ss:$28 sps:$4 sm:$0xff]  }
  0x84   :  { %1167 = vmatprep.subr.bf16.mxu1 %v1736_v13  ;;  %v1775_v13 = vld [vmem:[#allocation7 + $0xbc] ss:$28 sps:$4 sm:$0xff]  }
  0x85   :  { %1125 = vmatpush1.bf16.msra.mxu0 %v1731_v14  ;;  %v1773_v14 = vld [vmem:[#allocation7 + $0xb8] ss:$28 sps:$4 sm:$0xff]  }
  0x86   :  { %1126 = vmatprep.subr.bf16.mxu0 %v1739_v16  ;;  %v1779_v16 = vld [vmem:[#allocation7 + $0xf4] ss:$28 sps:$4 sm:$0xff]  }
  0x87   :  { %1168 = vmatpush1.bf16.msra.mxu1 %v1734_v15  ;;  %v1776_v15 = vld [vmem:[#allocation7 + $0xc0] ss:$28 sps:$4 sm:$0xff]  }
  0x88   :  { %1169 = vmatprep.subr.bf16.mxu1 %v1742_v17  ;;  %v1777_v17 = vld [vmem:[#allocation7 + $0xf0] ss:$28 sps:$4 sm:$0xff]  }
  0x89   :  { %1127 = vmatpush1.bf16.msra.mxu0 %v1737_v18  ;;  %v1780_v18 = vld [vmem:[#allocation7 + $0xf8] ss:$28 sps:$4 sm:$0xff]  }
  0x8a   :  { %1128 = vmatprep.subr.bf16.mxu0 %v1745_v20  ;;  %v1781_v20 = vld [vmem:[#allocation7 + $0x128] ss:$28 sps:$4 sm:$0xff]  }
  0x8b   :  { %1170 = vmatpush1.bf16.msra.mxu1 %v1740_v19  ;;  %v1783_v19 = vld [vmem:[#allocation7 + $0x12c] ss:$28 sps:$4 sm:$0xff]  }
  0x8c   :  { %1171 = vmatprep.subr.bf16.mxu1 %v1748_v21  ;;  %v1784_v21 = vld [vmem:[#allocation7 + $0x130] ss:$28 sps:$4 sm:$0xff]  }
  0x8d   :  { %1129 = vmatpush1.bf16.msra.mxu0 %v1743_v22  ;;  %v1787_v22 = vld [vmem:[#allocation7 + $0x164] ss:$28 sps:$4 sm:$0xff]  }
  0x8e   :  { %1130 = vmatprep.subr.bf16.mxu0 %v1751_v24  ;;  %v1788_v24 = vld [vmem:[#allocation7 + $0x168] ss:$28 sps:$4 sm:$0xff]  }
  0x8f   :  { %1172 = vmatpush1.bf16.msra.mxu1 %v1746_v23  ;;  %v1785_v23 = vld [vmem:[#allocation7 + $0x160] ss:$28 sps:$4 sm:$0xff]  }
  0x90   :  { %1173 = vmatprep.subr.bf16.mxu1 %v1754_v25  ;;  %v1791_v25 = vld [vmem:[#allocation7 + $0x19c] ss:$28 sps:$4 sm:$0xff]  }
  0x91   :  { %1131 = vmatpush1.bf16.msra.mxu0 %v1749_v26  ;;  %v1789_v26 = vld [vmem:[#allocation7 + $0x198] ss:$28 sps:$4 sm:$0xff]  }
  0x92   :  { %1132 = vmatprep.subr.bf16.mxu0 %v1757_v28  ;;  %v795_v28 = vlaneseq }
  0x93   :  { %1174 = vmatpush1.bf16.msra.mxu1 %v1752_v27  ;;  %v1792_v27 = vld [vmem:[#allocation7 + $0x1a0] ss:$28 sps:$4 sm:$0xff]  }
  0x94   :  { %1175 = vmatprep.subr.bf16.mxu1 %v1760_v29  ;;  %v2045_v29 = vshrl.u32 %v795_v28, 7 }
  0x95   :  { %1133 = vmatpush1.bf16.msra.mxu0 %v1755_v30 }
  0x96   :  { %1204 = vmatprep.subr.bf16.mxu0 %v1763_v32  ;;  %v797_v30 = vsub.s32 0, %v2045_v29  ;;  %v2052_v32 = vld [vmem:[%s2082_s4] sm:$0xff]  ;;  %s1953_s4 = smov [#allocation8]  }
  0x97   :  { %1176 = vmatpush1.bf16.msra.mxu1 %v1758_v31  ;;  %v805_v31 = vsub.s32 2, %v2045_v29  ;;  %s1377_s8 = sshll.u32 %s1953_s4, 4  ;;  %s1378_s8 = int_to_ptr.vmem [resolvable:$true] %s1377_s8 }
  0x98   :  { %1614 = vmatprep.subr.bf16.mxu1 %v1950_v38  ;;  %s1915_s9 = scalar_lea.vmem %s1378_s8, 1792  ;;  %p1920_p11 = scmp.lt.s32.totalorder %s1378_s8, %s1378_s8 }
  0x99   :  { %p1916_p10 = scmp.ne.s32.totalorder %s1378_s8, %s1915_s9  ;;  %p1921_p12 = scmp.lt.s32.totalorder %s1915_s9, %s1915_s9 }
  0x9b   :  { %p1922_p13 = por %p1921_p12, %p1920_p11 }
  0x9d   :  { %p1923_p0 = pnand %p1922_p13, %p1916_p10 }
 0x12b   :  { %v1526_v34 = vpop.f32.mrb[0].mxu0 }
 0x12c   :  { %v1527_v36 = vpop.f32.mrb[1].mxu0 }
 0x12d   :  { %v1528_v37 = vadd.f32 %v1527_v36, %v1526_v34  ;;  %v1529_v39 = vpop.f32.mrb[2].mxu0  ;;  %v1548_v40 = vpop.f32.mrb[0].mxu1  ;;  %v798_v34 = vrot.slane %v2052_v32, %v797_v30 }
 0x12e   :  { %v1530_v41 = vpop.f32.mrb[3].mxu0  ;;  %v1549_v44 = vpop.f32.mrb[1].mxu1 }
 0x12f   :  { %v597_v42 = vadd.f32 %v1528_v37, %v1390_v35  ;;  %v1531_v43 = vadd.f32 %v1530_v41, %v1529_v39  ;;  %v1550_v45 = vadd.f32 %v1549_v44, %v1548_v40  ;;  %v1551_v46 = vpop.f32.mrb[2].mxu1 }
 0x130   :  { %v1552_v48 = vpop.f32.mrb[3].mxu1 }
 0x131   :  { %v600_v47 = vadd.f32 %v1531_v43, %v1390_v35  ;;  %v638_v49 = vadd.f32 %v1550_v45, %v597_v42  ;;  %v1553_v50 = vadd.f32 %v1552_v48, %v1551_v46  ;;  %v806_v35 = vrot.slane %v2052_v32, %v805_v31 }
 0x133   :  { %v641_v51 = vadd.f32 %v1553_v50, %v600_v47 }
 0x14b   :  { %v1570_v52 = vpop.f32.mrb[4].mxu0 }
 0x14c   :  { %v1571_v53 = vpop.f32.mrb[5].mxu0 }
 0x14d   :  { %v719_v54 = vpop.f32.mrb[4].mxu1  ;;  %v1572_v55 = vadd.f32 %v1571_v53, %v1570_v52  ;;  %v1573_v56 = vpop.f32.mrb[6].mxu0 }
 0x14e   :  { %v1612_v57 = vpop.f32.mrb[5].mxu1  ;;  %v1574_v58 = vpop.f32.mrb[7].mxu0 }
 0x14f   :  { %v722_v59 = vpop.f32.mrb[6].mxu1  ;;  %v679_v60 = vadd.f32 %v1572_v55, %v638_v49  ;;  %v1575_v61 = vadd.f32 %v1574_v58, %v1573_v56 }
 0x150   :  { %v1613_v62 = vpop.f32.mrb[7].mxu1 }
 0x151   :  { %v720_v63 = vadd.f32 %v719_v54, %v679_v60  ;;  %v682_v0 = vadd.f32 %v1575_v61, %v641_v51 }
 0x153   :  { %v723_v1 = vadd.f32 %v722_v59, %v682_v0  ;;  %v726_v2 = vmax.f32 %v720_v63, 0.0 }
 0x155   :  { %v727_v3 = vmax.f32 %v723_v1, 0.0 }
 0x157   :  { %v728_v6 = vpack.c.bf16 %v727_v3, %v726_v2 }
 0x159   :  { %1151 = vmatmul.mubr.bf16.vlgmr.msra.gmra.mrb[8].mxu0 %v728_v6  ;;  %1194 = vmatmul.mubr.bf16.vlgmr.msra.gmra.mrb[8].mxu1 %v728_v6 }
 0x15a   :  { %1205 = vmatpush1.bf16.msra.mxu0 %v1761_v4  ;;  %1615 = vmatpush3.bf16.msra.mxu1 %v1764_v5 }
 0x15b   :  { %1206 = vmatprep.subr.bf16.mxu0 %v1767_v7  ;;  %1616 = vmatprep.subr.bf16.mxu1 %v1950_v38 }
 0x15c   :  { %1236 = vmatprep.mubr.bf16.mxu0 %v1952_v33  ;;  %1630 = vmatprep.mubr.msk.bf16.mxu1 %vm1951_vm0, %v1950_v38  ;;  %v801_v33 = vsub.s32 1, %v2045_v29 }
 0x15e   :  { %1207 = vmatpush1.bf16.msra.mxu0 %v1765_v8  ;;  %1617 = vmatpush3.bf16.msra.mxu1 %v1768_v9  ;;  %v802_v36 = vrot.slane %v2052_v32, %v801_v33 }
 0x15f   :  { %1208 = vmatprep.subr.bf16.mxu0 %v1771_v10  ;;  %1618 = vmatprep.subr.bf16.mxu1 %v1950_v38 }
 0x162   :  { %1209 = vmatpush1.bf16.msra.mxu0 %v1769_v11  ;;  %1619 = vmatpush3.bf16.msra.mxu1 %v1772_v12 }
 0x163   :  { %1210 = vmatprep.subr.bf16.mxu0 %v1775_v13  ;;  %1620 = vmatprep.subr.bf16.mxu1 %v1950_v38 }
 0x166   :  { %1211 = vmatpush1.bf16.msra.mxu0 %v1773_v14  ;;  %1621 = vmatpush3.bf16.msra.mxu1 %v1776_v15 }
 0x167   :  { %1212 = vmatprep.subr.bf16.mxu0 %v1779_v16  ;;  %1622 = vmatprep.subr.bf16.mxu1 %v1950_v38 }
 0x16a   :  { %1213 = vmatpush1.bf16.msra.mxu0 %v1777_v17  ;;  %1623 = vmatpush3.bf16.msra.mxu1 %v1780_v18 }
 0x16b   :  { %1214 = vmatprep.subr.bf16.mxu0 %v1783_v19  ;;  %1624 = vmatprep.subr.bf16.mxu1 %v1950_v38 }
 0x16e   :  { %1215 = vmatpush1.bf16.msra.mxu0 %v1781_v20  ;;  %1625 = vmatpush3.bf16.msra.mxu1 %v1784_v21 }
 0x16f   :  { %1216 = vmatprep.subr.bf16.mxu0 %v1787_v22  ;;  %1626 = vmatprep.subr.bf16.mxu1 %v1950_v38 }
 0x172   :  { %1217 = vmatpush1.bf16.msra.mxu0 %v1785_v23  ;;  %1627 = vmatpush3.bf16.msra.mxu1 %v1788_v24  ;;  %v813_v23 = vsub.s32 4, %v2045_v29  ;;  %v821_v24 = vsub.s32 6, %v2045_v29 }
 0x173   :  { %1218 = vmatprep.subr.bf16.mxu0 %v1791_v25  ;;  %1628 = vmatprep.subr.bf16.mxu1 %v1950_v38  ;;  %v809_v38 = vsub.s32 3, %v2045_v29  ;;  %v817_v25 = vsub.s32 5, %v2045_v29 }
 0x175   :  { %v810_v37 = vrot.slane %v2052_v32, %v809_v38  ;;  %v818_v30 = vrot.slane %v2052_v32, %v817_v25 }
 0x176   :  { %1219 = vmatpush1.bf16.msra.mxu0 %v1789_v26  ;;  %1629 = vmatpush3.bf16.msra.mxu1 %v1792_v27  ;;  %v814_v26 = vrot.slane %v2052_v32, %v813_v23  ;;  %v822_v27 = vrot.slane %v2052_v32, %v821_v24 }
 0x179   :  { %1237 = vmatmul.mubr.bf16.vlgmr.msra.gmra.mrb[12].mxu0 %v728_v6  ;;  %1631 = vmatmul.mubr.bf16.vlgmr.msra.gmra.mrb[12].mxu1 %v728_v6 }
 0x22c   :  { %v1152_v39 = vpop.f32.mrb[8].mxu0  ;;  %v1195_v40 = vpop.f32.mrb[8].mxu1 }
 0x22d   :  { %v1153_v41 = vadd.f32 %v1152_v39, %v798_v34  ;;  %v1196_v42 = vadd.f32 %v1195_v40, %v806_v35  ;;  %v1154_v43 = vpop.f32.mrb[9].mxu0  ;;  %v1197_v44 = vpop.f32.mrb[9].mxu1 }
 0x22e   :  { %v1155_v45 = vadd.f32 %v1154_v43, %v802_v36  ;;  %v1198_v46 = vadd.f32 %v1197_v44, %v810_v37  ;;  %v1156_v47 = vpop.f32.mrb[10].mxu0  ;;  %v1199_v48 = vpop.f32.mrb[10].mxu1 }
 0x22f   :  { %v1288_v49 = vsub.f32 0.0, %v1153_v41  ;;  %v1290_v50 = vsub.f32 0.0, %v1196_v42  ;;  %v1157_v51 = vadd.f32 %v1156_v47, %v798_v34  ;;  %v1200_v52 = vadd.f32 %v1199_v48, %v806_v35  ;;  %v1158_v53 = vpop.f32.mrb[11].mxu0  ;;  %v1201_v54 = vpop.f32.mrb[11].mxu1 }
 0x230   :  { %v1289_v55 = vsub.f32 0.0, %v1155_v45  ;;  %v1291_v56 = vsub.f32 0.0, %v1198_v46  ;;  %v1159_v57 = vadd.f32 %v1158_v53, %v802_v36  ;;  %v1202_v58 = vadd.f32 %v1201_v54, %v810_v37 }
 0x231   :  { %v1302_v59 = vmul.f32 1.442695, %v1288_v49  ;;  %v1306_v60 = vmul.f32 1.442695, %v1290_v50  ;;  %v1295_v61 = vsub.f32 0.0, %v1157_v51  ;;  %v1297_v62 = vsub.f32 0.0, %v1200_v52 }
 0x232   :  { %v1304_v63 = vmul.f32 1.442695, %v1289_v55  ;;  %v1308_v0 = vmul.f32 1.442695, %v1291_v56  ;;  %v1296_v1 = vsub.f32 0.0, %v1159_v57  ;;  %v1298_v2 = vsub.f32 0.0, %v1202_v58 }
 0x233   :  { %1793 = vpow2.f32 %v1302_v59  ;;  %v1316_v3 = vmul.f32 1.442695, %v1295_v61  ;;  %v1320_v4 = vmul.f32 1.442695, %v1297_v62 }
 0x234   :  { %1795 = vpow2.f32 %v1306_v60  ;;  %v1318_v5 = vmul.f32 1.442695, %v1296_v1  ;;  %v1322_v6 = vmul.f32 1.442695, %v1298_v2 }
 0x235   :  { %1797 = vpow2.f32 %v1304_v63 }
 0x236   :  { %1799 = vpow2.f32 %v1308_v0 }
 0x237   :  { %1801 = vpow2.f32 %v1316_v3 }
 0x238   :  { %1803 = vpow2.f32 %v1320_v4 }
 0x239   :  { %1805 = vpow2.f32 %v1318_v5 }
 0x23a   :  { %1807 = vpow2.f32 %v1322_v6 }
 0x23d   :  { %v1794_v7 = vpop.eup %1793 }
 0x23e   :  { %v1796_v8 = vpop.eup %1795  ;;  %v1330_v9 = vadd.f32 1.0, %v1794_v7 }
 0x23f   :  { %v1798_v10 = vpop.eup %1797  ;;  %v1332_v11 = vadd.f32 1.0, %v1796_v8 }
 0x240   :  { %v1800_v12 = vpop.eup %1799  ;;  %1809 = vrcp.f32 %v1330_v9  ;;  %v1331_v13 = vadd.f32 1.0, %v1798_v10 }
 0x241   :  { %v1802_v14 = vpop.eup %1801  ;;  %1811 = vrcp.f32 %v1332_v11  ;;  %v1333_v15 = vadd.f32 1.0, %v1800_v12 }
 0x242   :  { %v1804_v16 = vpop.eup %1803  ;;  %1813 = vrcp.f32 %v1331_v13  ;;  %v1337_v17 = vadd.f32 1.0, %v1802_v14 }
 0x243   :  { %v1806_v18 = vpop.eup %1805  ;;  %1815 = vrcp.f32 %v1333_v15  ;;  %v1339_v19 = vadd.f32 1.0, %v1804_v16 }
 0x244   :  { %v1808_v20 = vpop.eup %1807  ;;  %1817 = vrcp.f32 %v1337_v17  ;;  %v1338_v21 = vadd.f32 1.0, %v1806_v18 }
 0x245   :  { %1819 = vrcp.f32 %v1339_v19  ;;  %v1340_v22 = vadd.f32 1.0, %v1808_v20 }
 0x246   :  { %1821 = vrcp.f32 %v1338_v21 }
 0x247   :  { %1823 = vrcp.f32 %v1340_v22 }
 0x24a   :  { %v1810_v28 = vpop.eup %1809 }
 0x24b   :  { %v1812_v31 = vpop.eup %1811  ;;  %1358 = vst [vmem:[#allocation8] sm:$0xff] %v1810_v28 }
 0x24c   :  { %v1814_v33 = vpop.eup %1813  ;;  %1360 = vst [vmem:[#allocation8 + $0x10] sm:$0xff] %v1812_v31  ;;  %v1238_v38 = vpop.f32.mrb[12].mxu0 }
 0x24d   :  { %v1281_v34 = vpop.f32.mrb[12].mxu1  ;;  %v1816_v35 = vpop.eup %1815  ;;  %1359 = vst [vmem:[#allocation8 + $0x8] sm:$0xff] %v1814_v33  ;;  %v1239_v36 = vadd.f32 %v1238_v38, %v814_v26 }
 0x24e   :  { %v1282_v37 = vadd.f32 %v1281_v34, %v822_v27  ;;  %v1240_v39 = vpop.f32.mrb[13].mxu0  ;;  %v1632_v29 = vpop.f32.mrb[13].mxu1  ;;  %1361 = vst [vmem:[#allocation8 + $0x18] sm:$0xff] %v1816_v35 }
 0x24f   :  { %v1818_v40 = vpop.eup %1817  ;;  %v1241_v41 = vadd.f32 %v1240_v39, %v818_v30  ;;  %v1242_v42 = vpop.f32.mrb[14].mxu0  ;;  %v1292_v32 = vsub.f32 0.0, %v1239_v36 }
 0x250   :  { %v1284_v43 = vpop.f32.mrb[14].mxu1  ;;  %v1820_v44 = vpop.eup %1819  ;;  %1365 = vst [vmem:[#allocation8 + $0x38] sm:$0xff] %v1818_v40  ;;  %v1294_v45 = vsub.f32 0.0, %v1282_v37  ;;  %v1243_v46 = vadd.f32 %v1242_v42, %v814_v26 }
 0x251   :  { %v1285_v47 = vadd.f32 %v1284_v43, %v822_v27  ;;  %v1244_v48 = vpop.f32.mrb[15].mxu0  ;;  %v1633_v49 = vpop.f32.mrb[15].mxu1  ;;  %1367 = vst [vmem:[#allocation8 + $0x48] sm:$0xff] %v1820_v44  ;;  %v1293_v51 = vsub.f32 0.0, %v1241_v41  ;;  %v1310_v54 = vmul.f32 1.442695, %v1292_v32 }
 0x252   :  { %v1822_v50 = vpop.eup %1821  ;;  %v1245_v52 = vadd.f32 %v1244_v48, %v818_v30  ;;  %v1314_v55 = vmul.f32 1.442695, %v1294_v45  ;;  %v1299_v56 = vsub.f32 0.0, %v1243_v46 }
 0x253   :  { %v1824_v53 = vpop.eup %1823  ;;  %1366 = vst [vmem:[#allocation8 + $0x40] sm:$0xff] %v1822_v50  ;;  %v1301_v57 = vsub.f32 0.0, %v1285_v47  ;;  %v1312_v58 = vmul.f32 1.442695, %v1293_v51  ;;  %1825 = vpow2.f32 %v1310_v54 }
 0x254   :  { %1368 = vst [vmem:[#allocation8 + $0x50] sm:$0xff] %v1824_v53  ;;  %v1300_v59 = vsub.f32 0.0, %v1245_v52  ;;  %v1324_v60 = vmul.f32 1.442695, %v1299_v56  ;;  %1827 = vpow2.f32 %v1314_v55 }
 0x255   :  { %v1328_v61 = vmul.f32 1.442695, %v1301_v57  ;;  %1829 = vpow2.f32 %v1312_v58 }
 0x256   :  { %v1326_v62 = vmul.f32 1.442695, %v1300_v59  ;;  %1831 = vpow2.f32 %v1324_v60 }
 0x257   :  { %1833 = vpow2.f32 %v1328_v61 }
 0x258   :  { %1835 = vpow2.f32 %v1326_v62 }
 0x25d   :  { %v1826_v63 = vpop.eup %1825 }
 0x25e   :  { %v1828_v0 = vpop.eup %1827  ;;  %v1334_v1 = vadd.f32 1.0, %v1826_v63 }
 0x25f   :  { %v1830_v2 = vpop.eup %1829  ;;  %v1336_v3 = vadd.f32 1.0, %v1828_v0 }
 0x260   :  { %v1832_v4 = vpop.eup %1831  ;;  %1837 = vrcp.f32 %v1334_v1  ;;  %v1335_v5 = vadd.f32 1.0, %v1830_v2 }
 0x261   :  { %v1834_v6 = vpop.eup %1833  ;;  %1839 = vrcp.f32 %v1336_v3  ;;  %v1341_v7 = vadd.f32 1.0, %v1832_v4 }
 0x262   :  { %v1836_v8 = vpop.eup %1835  ;;  %1841 = vrcp.f32 %v1335_v5  ;;  %v1343_v9 = vadd.f32 1.0, %v1834_v6 }
 0x263   :  { %1843 = vrcp.f32 %v1341_v7  ;;  %v1342_v10 = vadd.f32 1.0, %v1836_v8 }
 0x264   :  { %1845 = vrcp.f32 %v1343_v9 }
 0x265   :  { %1847 = vrcp.f32 %v1342_v10 }
 0x26a   :  { %v1838_v11 = vpop.eup %1837 }
 0x26b   :  { %v1840_v12 = vpop.eup %1839  ;;  %1362 = vst [vmem:[#allocation8 + $0x20] sm:$0xff] %v1838_v11 }
 0x26c   :  { %v1842_v13 = vpop.eup %1841  ;;  %1364 = vst [vmem:[#allocation8 + $0x30] sm:$0xff] %v1840_v12 }
 0x26d   :  { %v1844_v14 = vpop.eup %1843  ;;  %1363 = vst [vmem:[#allocation8 + $0x28] sm:$0xff] %v1842_v13 }
 0x26e   :  { %v1846_v15 = vpop.eup %1845  ;;  %1369 = vst [vmem:[#allocation8 + $0x58] sm:$0xff] %v1844_v14 }
 0x26f   :  { %v1848_v16 = vpop.eup %1847  ;;  %1371 = vst [vmem:[#allocation8 + $0x68] sm:$0xff] %v1846_v15 }
 0x270   :  { %1370 = vst [vmem:[#allocation8 + $0x60] sm:$0xff] %v1848_v16 }
 0x271   :  { %1926 = shalt.err (!%p1923_p0)
}
 0x272   :  { %s1927_s12 = scalar_lea.hbm %s2083_s5, 1792 }
 0x273   :  { %p1928_p1 = scmp.ne.s32.totalorder %s2083_s5, %s1927_s12  ;;  %p1931_p2 = scmp.lt.u32.totalorder %s1927_s12, %s2083_s5 }
 0x275   :  { %p1933_p3 = pnand %p1931_p2, %p1928_p1 }
 0x277   :  { %1936 = shalt.err (!%p1933_p3)
}
 0x278   :  { %s1954_s1 = smov 896   ;;  %s1955_s17 = smov 56  }
 0x279   :  { %1383 = dma.vmem_to_hbm [thread:$0]  %s1378_s8, 1792, %s2083_s5, [#allocation4], %s1954_s1, %s1954_s1, %s1955_s17  }
 0x27a   :  { %1941 = dma.done.wait [#allocation4], 1792  }
 0x27b   :  { %1942 = vsyncadd [#allocation4], 4294965504 }
 0x27c   :  { %1387 = vsyncpa [#allocation3], 1 }
 0x27d   :  { %1388 = vsyncpa [#allocation6], 1 }
 0x27e   :  { %1389 = vsyncpa [#allocation4], 1 }

</bundles_post_ra>
